<compile_context>
chip_gen: v6e
topology: v6e:2x2x1
jax: 0.10.0
libtpu: 0.0.40
codegen_flags: <defaults>
</compile_context>

<pallas_src>
import jax
import jax.numpy as jnp
from jax.experimental import pallas as pl
from jax.experimental.pallas import tpu as pltpu


def _cdiv(a: int, b: int) -> int:
    return -(-a // b)


def _vmem_limit_bytes() -> int:
    """Generation-aware scoped-VMEM limit for this kernel."""
    cap = None
    try:
        info = pltpu.get_tpu_info()
        cap = getattr(info, "vmem_capacity_bytes", None)
    except Exception:
        cap = None
    if not cap or cap <= 0:
        cap = 64 * 1024 * 1024  # conservative fallback: v7x per-TensorCore VMEM
    # At most ~half of physical VMEM, capped so v5e/v6e do not over-reserve.
    return int(max(16 * 1024 * 1024, min(cap // 2, 48 * 1024 * 1024)))


def _pick_inner_lanes(nb: int, c: int, t: int) -> int:
    """Lane-chunk width keeping the in-kernel f32 slab ~<= half the vreg file."""
    target_bytes = 128 * 1024
    lanes = target_bytes // max(1, nb * c * 4)
    lanes = max(128, (lanes // 128) * 128)
    if lanes >= t:
        return t          # whole block in one shot
    return min(lanes, 4096)


def _sse_kernel(w_ref, x_ref, o_ref):
    # w_ref: (C, 1)      -- 1x1-conv weight as a column vector (resident)
    # x_ref: (Nb, C, T)  -- one (batch-block, lane-tile) block
    # o_ref: (Nb, C, T)
    nb, c, t = x_ref.shape
    lane_chunk = _pick_inner_lanes(nb, c, t)

    # Hoisted once per grid step: f32 weight column, broadcastable over (Nb, C, L).
    w = w_ref[...].astype(jnp.float32)[None, :, :]          # (1, C, 1)

    def process(off, width):
        xs = x_ref[:, :, pl.ds(off, width)]                 # (Nb, C, width), native dtype
        # 1x1 conv == per-lane channel dot: VPU multiply + sublane reduce, f32 accum.
        logits = jnp.sum(xs.astype(jnp.float32) * w, axis=1, keepdims=True)
        gate = jax.nn.sigmoid(logits).astype(xs.dtype)      # (Nb, 1, width)
        o_ref[:, :, pl.ds(off, width)] = (gate * xs).astype(o_ref.dtype)

    n_full = t // lane_chunk
    rem = t - n_full * lane_chunk
    if n_full == 1 and rem == 0:
        process(0, t)                                       # single chunk, no loop
    else:
        if n_full > 0:
            def body(i, carry):
                process(pl.multiple_of(i * lane_chunk, lane_chunk), lane_chunk)
                return carry
            jax.lax.fori_loop(0, n_full, body, 0)
        if rem > 0:
            process(n_full * lane_chunk, rem)               # static (aligned) ragged tail


def _choose_blocking(n: int, c: int, hw: int, itemsize: int, block_budget: int):
    """Returns (nb, tile_hw, grid)."""
    per_image = c * hw * itemsize
    cols128 = _cdiv(hw, 128)

    if per_image <= block_budget and not (n == 1 and hw >= 256):
        # Whole-image blocks; group batches so blocks are MiB-class.  Keep at
        # least two grid steps when n >= 2 so both v7x TensorCores get work.
        nb_max = max(1, block_budget // per_image)
        nb_cap = 1 if n == 1 else max(1, n // 2)
        nb_cap = min(nb_cap, nb_max, 64)
        nb = 1
        for cand in range(nb_cap, 0, -1):
            if n % cand == 0:
                nb = cand
                break
        return nb, hw, (n // nb, 1)

    # Lane-tiled path: 128-multiple tiles sized by bytes; the last tile may be
    # partial (edge-block OOB writes are dropped by Pallas).  Also used for
    # single-image inputs so the grid has >= 2 parallel steps (v7x megacore).
    lanes_budget = max(128, (block_budget // max(1, c * itemsize)) // 128 * 128)
    n_tiles = max(2 if n == 1 else 1, _cdiv(cols128 * 128, lanes_budget))
    tile_hw = 128 * _cdiv(cols128, n_tiles)                 # balance tile sizes
    n_tiles = _cdiv(hw, tile_hw)
    return 1, tile_hw, (n, n_tiles)


def sse_layer(x_nchw: jax.Array, weight: jax.Array) -> jax.Array:
    """x_nchw: (N, C, H, W); weight: (1, C, 1, 1) (PyTorch Conv2d layout)."""
    n, c, h, w = x_nchw.shape
    hw = h * w
    itemsize = jnp.dtype(x_nchw.dtype).itemsize

    vmem_limit = _vmem_limit_bytes()
    # in + out blocks, each double-buffered, plus headroom for compiler
    # scratch/spills -> ~1/12 of the limit per block (2-4 MiB class).
    block_budget = max(256 * 1024, min(4 * 1024 * 1024, vmem_limit // 12))

    nb, tile_hw, grid = _choose_blocking(n, c, hw, itemsize, block_budget)

    x_flat = x_nchw.reshape(n, c, hw)
    w_c1 = weight.reshape(c, 1)

    flops = 3 * n * c * hw                        # channel dot (2) + gating mul (1)
    bytes_accessed = 2 * n * c * hw * itemsize + c * jnp.dtype(weight.dtype).itemsize

    out_flat = pl.pallas_call(
        _sse_kernel,
        out_shape=jax.ShapeDtypeStruct((n, c, hw), x_nchw.dtype),
        grid_spec=pltpu.PrefetchScalarGridSpec(
            num_scalar_prefetch=0,
            grid=grid,
            in_specs=[
                # Tiny weight, resident for every grid step.
                pl.BlockSpec((c, 1), lambda b, s: (0, 0)),
                pl.BlockSpec((nb, c, tile_hw), lambda b, s: (b, 0, s)),
            ],
            out_specs=pl.BlockSpec((nb, c, tile_hw), lambda b, s: (b, 0, s)),
        ),
        compiler_params=pltpu.CompilerParams(
            # Both axes fully independent -> megacore-shardable on v7x.
            dimension_semantics=("parallel", "parallel"),
            vmem_limit_bytes=vmem_limit,
        ),
        cost_estimate=pl.CostEstimate(
            flops=int(flops),
            transcendentals=int(n * hw),
            bytes_accessed=int(bytes_accessed),
        ),
    )(w_c1, x_flat)

    return out_flat.reshape(n, c, h, w)


def _reference(x_nchw, weight):
    # Pure-JAX reference of the PyTorch forward.
    w = weight.reshape(1, weight.shape[1], 1, 1)
    h = jax.nn.sigmoid(jnp.sum(x_nchw * w, axis=1, keepdims=True))
    return h * x_nchw


if __name__ == "__main__":
    key = jax.random.PRNGKey(0)
    k_x, k_w = jax.random.split(key)

    N, C, H, W = 2, 4, 16, 16
    x = jax.random.normal(k_x, (N, C, H, W), dtype=jnp.float32)
    # Deterministic Conv2d(C, 1, 1, bias=False) weight: (1, C, 1, 1).
    weight = jax.random.normal(k_w, (1, C, 1, 1), dtype=jnp.float32) * 0.1

    out = sse_layer(x, weight)
    out = jax.block_until_ready(out)

    ref = _reference(x, weight)
    assert out.shape == (N, C, H, W)
    assert jnp.allclose(out, ref, atol=1e-5, rtol=1e-5), "mismatch vs reference"

    print("KERNEL_OK")
</pallas_src>

<mosaic_0001>
module attributes {stable_mosaic.version = 11 : i64} {
  func.func @_sse_kernel(%arg0: i32, %arg1: i32, %arg2: memref<4x1xf32, #tpu.memory_space<vmem>>, %arg3: memref<1x4x256xf32, #tpu.memory_space<vmem>>, %arg4: memref<1x4x256xf32, #tpu.memory_space<vmem>>) attributes {dimension_semantics = [#tpu.dimension_semantics<parallel>, #tpu.dimension_semantics<parallel>], iteration_bounds = array<i64: 2, 1>, scalar_prefetch = 0 : i64, scratch_operands = 0 : i64, tpu.core_type = #tpu.core_type<tc>, window_params = [{pipeline_mode = #tpu.pipeline_mode<synchronous>, transform_indices = @transform_0, window_bounds = array<i64: 4, 1>}, {transform_indices = @transform_1, window_bounds = array<i64: 1, 4, 256>}, {transform_indices = @transform_2, window_bounds = array<i64: 1, 4, 256>}]} {
    %c0 = arith.constant 0 : index
    %c0_0 = arith.constant 0 : index
    %0 = vector.load %arg2[%c0, %c0_0] : memref<4x1xf32, #tpu.memory_space<vmem>>, vector<4x1xf32>
    %1 = vector.shape_cast %0 : vector<4x1xf32> to vector<1x4x1xf32>
    %c0_1 = arith.constant 0 : index
    %c0_2 = arith.constant 0 : index
    %c0_3 = arith.constant 0 : index
    %2 = vector.load %arg3[%c0_1, %c0_2, %c0_3] : memref<1x4x256xf32, #tpu.memory_space<vmem>>, vector<1x4x256xf32>
    %3 = vector.broadcast %1 : vector<1x4x1xf32> to vector<1x4x256xf32>
    %4 = arith.mulf %2, %3 : vector<1x4x256xf32>
    %cst = arith.constant dense<0.000000e+00> : vector<1x256xf32>
    %5 = vector.multi_reduction <add>, %4, %cst [1] : vector<1x4x256xf32> to vector<1x256xf32>
    %6 = vector.shape_cast %5 : vector<1x256xf32> to vector<1x1x256xf32>
    %7 = arith.negf %6 : vector<1x1x256xf32>
    %8 = math.exp %7 : vector<1x1x256xf32>
    %cst_4 = arith.constant 1.000000e+00 : f32
    %9 = vector.broadcast %cst_4 : f32 to vector<1x1x256xf32>
    %10 = arith.addf %9, %8 : vector<1x1x256xf32>
    %11 = arith.divf %9, %10 : vector<1x1x256xf32>
    %12 = vector.broadcast %11 : vector<1x1x256xf32> to vector<1x4x256xf32>
    %13 = arith.mulf %12, %2 : vector<1x4x256xf32>
    %c0_5 = arith.constant 0 : index
    %c0_6 = arith.constant 0 : index
    %c0_7 = arith.constant 0 : index
    %14 = vector.load %arg4[%c0_5, %c0_6, %c0_7] : memref<1x4x256xf32, #tpu.memory_space<vmem>>, vector<1x4x256xf32>
    tpu.vector_store %arg4[%c0_5, %c0_6, %c0_7], %13 {strides = array<i32>} : memref<1x4x256xf32, #tpu.memory_space<vmem>>, vector<1x4x256xf32>,
    return
  }
  func.func @transform_0(%arg0: i32, %arg1: i32) -> (i32, i32) {
    %c0_i32 = arith.constant 0 : i32
    %c0_i32_0 = arith.constant 0 : i32
    %c0_i32_1 = arith.constant 0 : i32
    return %c0_i32, %c0_i32_0 : i32, i32
  }
  func.func @transform_1(%arg0: i32, %arg1: i32) -> (i32, i32, i32) {
    %c0_i32 = arith.constant 0 : i32
    %c0_i32_0 = arith.constant 0 : i32
    return %arg0, %c0_i32, %arg1 : i32, i32, i32
  }
  func.func @transform_2(%arg0: i32, %arg1: i32) -> (i32, i32, i32) {
    %c0_i32 = arith.constant 0 : i32
    %c0_i32_0 = arith.constant 0 : i32
    return %arg0, %c0_i32, %arg1 : i32, i32, i32
  }
}

</mosaic_0001>

<bundles_post_ra>
// kernel: tpu_custom_call.1
= control target key start
LH: loop header
LB: loop body
LE: loop exit
PB: predicated region body
PF: predicated region fallthrough
CT: control target
= control target key end

     0   :  { %7 = vsyncpa [#allocation3], 0  ;;  %s699_s0 = inlined_call_operand.vmem [shape: f32[4,1], index: 0, kind: input, shape index: {}]   ;;  %s700_s1 = inlined_call_operand.hbm [shape: f32[2,4,256], index: 1, kind: input, shape index: {}]   ;;  %s701_s2 = inlined_call_operand.hbm [shape: f32[2,4,256], index: 2, kind: output, shape index: {}]  }
   0x1   :  { %9 = vsyncpa [#allocation3 + $0x1], 0 }
   0x2   :  { %10 = vsyncpa [#allocation4], 0 }
   0x3   :  { %12 = vsyncpa [#allocation4 + $0x1], 0  ;;  %s558_s9 = smov 0   ;;  %s560_s10 = smov 0  }
   0x4   :  { %s562_s11 = smov 0   ;;  %s564_s12 = smov 0  }
   0x5   :  { %s566_s13 = smov 0   ;;  %s568_s14 = smov 0  }
   0x6 LB: > { %s336_s15 = sadd.s32 4294967295, %s537_s14   ;;  %s337_s16 = sadd.s32 4294967294, %s537_s14   ;;  %s537_s14 = sphi %s568_s14, %s18_s14   ;;  %s533_s13 = sphi %s566_s13, %s713_s13   ;;  %s529_s12 = sphi %s564_s12, %s712_s12   ;;  %s525_s11 = sphi %s562_s11, %s711_s11   ;;  %s521_s10 = sphi %s560_s10, %s710_s10   ;;  %s517_s9 = sphi %s558_s9, %s709_s9  }
   0x7   : > { %s30_s17 = sadd.s32 1, %s533_s13  ;;  %s60_s18 = sadd.s32 1, %s525_s11 }
   0x8   : > { %p32_p0 = scmp.ge.s32.totalorder %s30_s17, 2  ;;  %p67_p1 = scmp.ne.s32.totalorder %s525_s11, %s521_s10 }
   0x9   : > { %p68_p2 = scmp.eq.s32.totalorder %s537_s14, 0  ;;  %p73_p3 = scmp.ne.s32.totalorder %s521_s10, %s517_s9 }
   0xa   : > { %s715_s17 = smov (%p32_p0, %s30_s17), 0  ;;  %p74_p5 = scmp.eq.s32.totalorder %s336_s15, 0 }
   0xb   : > { %p599_p4 = por %p68_p2, %p67_p1  ;;  %s55_s20 = ssub.s32 %s533_s13, %s715_s17 }
   0xc   : > { %p99_p6 = scmp.eq.s32.totalorder %s336_s15, 1  ;;  %p58_p7 = scmp.eq.s32.totalorder %s55_s20, 0 }
   0xd   : > { %p605_p8 = por %p74_p5, %p73_p3  ;;  %p105_p10 = scmp.eq.s32.totalorder %s337_s16, 1 }
   0xe   : > { %p609_p9 = por %p99_p6, %p67_p1  ;;  %p367_p13 = scmp.lt.s32.totalorder %s537_s14, 2 }
   0xf   : > { %s614_s23 = scalar_select %p58_p7, %s525_s11, %s60_s18  }
  0x10   : > { %p616_p11 = por %p105_p10, %p73_p3  ;;  %s128_s25 = sand.u32 1, %s525_s11  }
  0x11   : > { %s340_s26 = sshll.u32 %s128_s25, 3  ;;  %s353_s27 = sshll.u32 %s533_s13, 7 }
  0x12   : > { %s705_s24 = scalar_select %p616_p11, 1, 0 }
  0x13   : > { %s140_s30 = scalar_lea.hbm %s700_s1, %s353_s27  ;;  %s132_s3 = scalar_lea.vmem [#allocation2], %s340_s26 }
  0x14   : > { %s142_s4 = sshll.u32 %s132_s3, 4  ;;  %p629_p0 = pnand %p367_p13, %p599_p4  ;;  %s143_s4 = int_to_ptr.vmem [resolvable:$true] %s142_s4 }
  0x15   : > { %p343_p1 = scmp.ge.s32.totalorder %s537_s14, 1  ;;  %p147_p2 = scmp.lt.s32.totalorder %s537_s14, 3 }
  0x16   : > { %s129_s6 = scalar_lea.sflag [#allocation3], %s128_s25  ;;  %p431_p3 = pneg %p629_p0 }
  0x17   : > { %s442_s7 = scalar_lea.vmem %s143_s4, 128  ;;  %s539_s8 = smov [#allocation2]  }
  0x18   : > { %p443_p5 = scmp.ne.s32.totalorder %s143_s4, %s442_s7  ;;  %s447_s15 = sshll.u32 %s539_s8, 4  ;;  %s448_s15 = int_to_ptr.vmem [resolvable:$false] %s447_s15 }
  0x19   : > { %s449_s16 = scalar_lea.vmem %s448_s15, 256  ;;  %p450_p10 = scmp.lt.s32.totalorder %s143_s4, %s448_s15 }
  0x1a   : > { %p445_p6 = pnand %p443_p5, %p431_p3  ;;  %p451_p12 = scmp.lt.s32.totalorder %s449_s16, %s442_s7 }
  0x1c   : > { %p446_p7 = pneg %p445_p6  ;;  %p452_p4 = por %p451_p12, %p450_p10 }
  0x1e   : > { %p453_p13 = pnand %p452_p4, %p446_p7 }
  0x20   : > { %456 = shalt.err (!%p453_p13)
}
  0x21   : > { %362 = dma.hbm_to_vmem [thread:$0]  (!%p629_p0), %s140_s30, 128, %s143_s4, %s129_s6  }
  0x22   : > { %p148_p11 = pnand %p343_p1, %p147_p2 }
  0x23   : > { %s644_s18 = sand.u32 (!%p148_p11), 1, %s521_s10  }
  0x24   : > { %151 = sbr.rel (%p148_p11) target bundleno = 236 (0xec), region = 28  ;;  %s344_s19 = sshll.u32 (!%p148_p11), %s644_s18, 3 }
  0x25   : > { %s154_s20 = scalar_lea.sflag (!%p148_p11), [#allocation3], %s644_s18  ;;  %s157_s25 = scalar_lea.vmem (!%p148_p11), [#allocation2], %s344_s19 }
  0x29   : > { %508 = dma.done.wait (%p605_p8), %s154_s20, 128  }
  0x2a   : > { %510 = vsyncadd (%p605_p8), %s154_s20, 4294967168  ;;  %v540_v0 = vmov 0   ;;  %v180_v1 = vld [vmem:[%s699_s0] sm:$0xf]  ;;  %v541_v2 = vmov 839922192   ;;  %v189_v4 = vlaneseq }
  0x2b   : > { %419 = vset.pattern.permute.xlu0 %v540_v0  ;;  %v187_v3 = vunpack.c.l.s4 %v541_v2  ;;  %v181_v8 = vld [vmem:[%s157_s25] sm:$0xff]  ;;  %vm198_vm0 = vcmask 1043456   ;;  %s354_s21 = sshll.u32 %s529_s12, 7  ;;  %s177_s28 = scalar_lea.vmem [#allocation5], %s344_s19 }
  0x2c   : > { %184 = vperm.xlu0 %419, %v180_v1   ;;  %v190_v6 = vshrl.u32 %v189_v4, 7  ;;  %v226_v33 = vcombine.high %v181_v8, %v181_v8  ;;  %s252_s29 = sshll.u32 %s177_s28, 4  ;;  %s250_s4 = scalar_lea.hbm %s701_s2, %s354_s21  ;;  %s253_s29 = int_to_ptr.vmem [resolvable:$true] %s252_s29 }
  0x2d   : > { %v188_v5 = vunpack.c.0.s8 %v187_v3  ;;  %s236_s5 = scalar_lea.sflag [#allocation4], %s644_s18  ;;  %s457_s6 = scalar_lea.vmem %s253_s29, 128 }
  0x2e   : > { %p458_p8 = scmp.ne.s32.totalorder %s253_s29, %s457_s6  ;;  %s542_s7 = smov [#allocation5]  }
  0x2f   : > { %v191_v7 = vsub.s32 %v188_v5, %v190_v6  ;;  %s461_s12 = sshll.u32 %s542_s7, 4  ;;  %s462_s12 = int_to_ptr.vmem [resolvable:$false] %s461_s12 }
  0x30   : > { %p459_p11 = pnand %p458_p8, %p609_p9  ;;  %s463_s8 = scalar_lea.vmem %s462_s12, 256 }
  0x31   : > { %p464_p0 = scmp.lt.s32.totalorder %s253_s29, %s462_s12  ;;  %p465_p1 = scmp.lt.s32.totalorder %s463_s8, %s457_s6 }
  0x32   : > { %p460_p12 = pneg %p459_p11 }
  0x33   : > { %p466_p2 = por %p465_p1, %p464_p0 }
  0x35   : > { %p467_p3 = pnand %p466_p2, %p460_p12 }
  0xa7   : > { %v185_v9 = vpop.permute.xlu0 %184 }
  0xa8   : > { %v192_v10 = vrot.slane %v185_v9, %v191_v7 }
  0xaa   : > { %v194_v11 = vmul.f32 %v192_v10, %v181_v8 }
  0xac   : > { %v196_v12 = vcombine.high %v194_v11, %v194_v11  ;;  %v199_v13 = vsel %vm198_vm0, %v194_v11, 0.0 }
  0xad   : > { %v200_v14 = vrot.slane %v199_v13, 4 }
  0xae   : > { %v206_v15 = vsel %vm198_vm0, %v196_v12, 0.0 }
  0xaf   : > { %v201_v16 = vadd.f32 %v200_v14, %v199_v13  ;;  %v207_v17 = vrot.slane %v206_v15, 4 }
  0xb1   : > { %v202_v18 = vrot.slane %v201_v16, 2  ;;  %v208_v19 = vadd.f32 %v207_v17, %v206_v15 }
  0xb3   : > { %v203_v20 = vadd.f32 %v202_v18, %v201_v16  ;;  %v209_v21 = vrot.slane %v208_v19, 2 }
  0xb5   : > { %v204_v22 = vrot.slane %v203_v20, 1  ;;  %v210_v23 = vadd.f32 %v209_v21, %v208_v19 }
  0xb7   : > { %v205_v24 = vadd.f32 %v204_v22, %v203_v20  ;;  %v211_v25 = vrot.slane %v210_v23, 1 }
  0xb9   : > { %v212_v26 = vadd.f32 %v211_v25, %v210_v23  ;;  %v346_v27 = vmul.f32 -1.442695, %v205_v24 }
  0xbb   : > { %421 = vpow2.f32 %v346_v27  ;;  %v347_v28 = vmul.f32 -1.442695, %v212_v26 }
  0xbd   : > { %423 = vpow2.f32 %v347_v28 }
  0xc8   : > { %v422_v29 = vpop.eup %421 }
  0xc9   : > { %v219_v30 = vadd.f32 1.0, %v422_v29 }
  0xca   : > { %v424_v31 = vpop.eup %423 }
  0xcb   : > { %v220_v32 = vadd.f32 1.0, %v424_v31  ;;  %425 = vrcp.f32 %v219_v30 }
  0xcd   : > { %427 = vrcp.f32 %v220_v32 }
  0xd8   : > { %v426_v34 = vpop.eup %425 }
  0xd9   : > { %v228_v36 = vmul.f32 %v426_v34, %v181_v8 }
  0xda   : > { %v428_v35 = vpop.eup %427 }
  0xdb   : > { %v229_v37 = vmul.f32 %v428_v35, %v226_v33 }
  0xdd   : > { %v232_v38 = vcombine.low %v228_v36, %v229_v37 }
  0xdf   : > { %234 = vst [vmem:[%s177_s28] sm:$0xff] %v232_v38 }
  0xe0   : > { %470 = shalt.err (!%p467_p3)
}
  0xe1   : > { %s471_s15 = scalar_lea.hbm %s250_s4, 128  ;;  %s475_s19 = scalar_lea.hbm %s701_s2, 256 }
  0xe2   : > { %p472_p5 = scmp.ne.s32.totalorder %s250_s4, %s471_s15  ;;  %p476_p10 = scmp.lt.s32.totalorder %s250_s4, %s701_s2 }
  0xe3   : > { %p477_p4 = scmp.lt.s32.totalorder %s475_s19, %s471_s15 }
  0xe4   : > { %p473_p6 = pnand %p472_p5, %p609_p9 }
  0xe5   : > { %p478_p13 = por %p477_p4, %p476_p10 }
  0xe6   : > { %p474_p7 = pneg %p473_p6 }
  0xe8   : > { %p479_p8 = pnand %p478_p13, %p474_p7 }
  0xea   : > { %482 = shalt.err (!%p479_p8)
}
  0xeb   : > { %357 = dma.vmem_to_hbm [thread:$0]  (%p609_p9), %s253_s29, 128, %s250_s4, %s236_s5  }
  0xec PF: > { %s264_s26 = sand.u32 1, %s517_s9   ;;  %p707_p11 = scmp.ne.s32.totalorder %s705_s24, 0 }
  0xed   : > { %p708_p12 = scmp.ge.s32.totalorder %s537_s14, 2  ;;  %s265_s27 = scalar_lea.sflag [#allocation4], %s264_s26 }
  0xef   : > { %p364_p0 = pnand %p708_p12, %p707_p11 }
  0xf1   : > { %p365_p1 = pneg %p364_p0 }
  0xf3   : > { %512 = dma.done.wait (%p365_p1), %s265_s27, 128  }
  0xf4   : > { %514 = vsyncadd (%p365_p1), %s265_s27, 4294967168  ;;  %s18_s14 = sadd.s32 1, %s537_s14   ;;  %s709_s9 = smov %s521_s10 }
  0xf5   : > { %p15_p2 = scmp.ge.s32.totalorder %s18_s14, 4   ;;  %s710_s10 = smov %s525_s11 }
  0xf6   : > { %s711_s11 = smov %s614_s23  ;;  %s712_s12 = smov %s533_s13 }
  0xf7   : > { %s713_s13 = smov %s715_s17  ;;  %17 = sbr.rel (!%p15_p2) target bundleno = 6 (0x6), region = 73 }
  0xfc   :  { %270 = vsyncpa [#allocation3], 1 }
  0xfd   :  { %272 = vsyncpa [#allocation3 + $0x1], 1 }
  0xfe   :  { %273 = vsyncpa [#allocation4], 1 }
  0xff   :  { %275 = vsyncpa [#allocation4 + $0x1], 1 }

</bundles_post_ra>
